<compile_context>
chip_gen: v6e
topology: v6e:2x2x1
jax: 0.10.0
libtpu: 0.0.40
codegen_flags: <defaults>
</compile_context>

<pallas_src>
import functools
import math

import jax
import jax.numpy as jnp
from jax.experimental import pallas as pl
from jax.experimental.pallas import tpu as pltpu


_LANES = 128
_TARGET_BLOCK_BYTES = 2 * 1024 * 1024   # per-input block (double-buffered by Pallas)
_MAX_BLOCK_ROWS = 1024                  # bounds masked stores / padded out buffer
_VMEM_LIMIT_BYTES = 32 * 1024 * 1024    # safe on v5e/v6e (128 MiB) and v7x (64 MiB)


def _cdiv(a, b):
    return -(-a // b)


def _round_up(n, m):
    return _cdiv(n, m) * m


def _is_pow2(n):
    return n & (n - 1) == 0


# --------------------------- in-kernel field sums -----------------------------


def _broadcast_field_sum(v, num_fields, embed_dim):
    """v: (rows, num_fields*embed_dim) lane-dense.

    Returns an array of the same shape where every embed_dim-wide lane group
    holds sum_f v[f, d] (the field sum, cyclically replicated).  Implemented
    with XLU lane rotations so the VPU / vld slots stay free.
    """
    if num_fields == 1:
        return v
    total = num_fields * embed_dim
    if _is_pow2(num_fields) and num_fields >= 4:
        # log2(F) roll+add doubling steps.
        s = v
        shift = embed_dim
        while shift < total:
            s = s + pltpu.roll(s, shift, 1)
            shift *= 2
        return s
    # generic: F-1 rotations of the original.
    s = v
    for k in range(1, num_fields):
        s = s + pltpu.roll(v, k * embed_dim, 1)
    return s


def _broadcast_field_sums_pair(v, num_fields, embed_dim):
    """Returns (sum_f v, sum_f v^2), both cyclically replicated over the lanes.

    In the generic branch each rolled tile is reused for BOTH accumulators
    (F-1 rolls total instead of 2*(F-1))."""
    vv = v * v
    if num_fields == 1:
        return v, vv
    total = num_fields * embed_dim
    if _is_pow2(num_fields) and num_fields > 4:
        s, q = v, vv
        shift = embed_dim
        while shift < total:
            s = s + pltpu.roll(s, shift, 1)
            q = q + pltpu.roll(q, shift, 1)
            shift *= 2
        return s, q
    s, q = v, vv
    for k in range(1, num_fields):
        r = pltpu.roll(v, k * embed_dim, 1)
        s = s + r
        q = q + r * r
    return s, q


# --------------------------------- kernels ------------------------------------


def _fm_reduce_kernel(x_ref, o_ref, *, num_fields, embed_dim):
    # x_ref: (tb, Fp*D) lane-dense, o_ref: (tb, 1)
    v = x_ref[...].astype(jnp.float32)
    s = _broadcast_field_sum(v, num_fields, embed_dim)       # XLU rolls
    # Fused single reduction:  sum_d S_d^2 - sum_{f,d} v^2
    #   = (1/F) * sum_lanes (s*s - F*v*v)
    t = s * s - v * v * jnp.float32(num_fields)              # one VPU pass
    # Single lane reduction on the (otherwise idle) MXU instead of the XLU.
    ones = jnp.ones((t.shape[1], 1), jnp.float32)
    r = jnp.dot(t, ones, preferred_element_type=jnp.float32)  # (tb, 1)
    o_ref[...] = (r * jnp.float32(0.5 / num_fields)).astype(o_ref.dtype)


def _fm_noreduce_kernel(x_ref, o_ref, *, num_fields, embed_dim):
    # x_ref: (tb, Fp*D) lane-dense, o_ref: (tb, D)
    v = x_ref[...].astype(jnp.float32)
    s, q = _broadcast_field_sums_pair(v, num_fields, embed_dim)
    # Only the first embed_dim lanes are needed; slice before squaring so the
    # VPU work is done on D lanes only.  (D < 128 writes via masked stores,
    # but that is only 1/F of the input traffic.)
    s0 = s[:, :embed_dim]
    q0 = q[:, :embed_dim]
    o_ref[...] = (0.5 * (s0 * s0 - q0)).astype(o_ref.dtype)


# --------------------------------- wrapper ------------------------------------


def factorization_machine(x, reduce_sum=True):
    """x: (batch, num_fields, embed_dim). Returns (batch, 1) or (batch, embed_dim)."""
    B, F, D = x.shape
    FD = F * D
    itemsize = jnp.dtype(x.dtype).itemsize

    # ---- lane-dense flattening (pad the field axis only if FD % 128 != 0) ----
    if FD % _LANES == 0:
        Fp, FDp = F, FD
        xin = x.reshape(B, FD)                               # free view
    else:
        lcm = D * _LANES // math.gcd(D, _LANES)              # keep period-D structure
        FDp = _round_up(FD, lcm)
        Fp = FDp // D
        # One-time copy; zero fields contribute 0 to both sums (divide by Fp).
        xin = jnp.pad(x, ((0, 0), (0, Fp - F), (0, 0))).reshape(B, FDp)

    # ---- batch tile: dtype-aware sublanes, balanced vs B, >=2 grid steps ----
    sub = max(8, 32 // itemsize)                             # 8 f32 / 16 bf16 / 32 int8
    row_bytes = FDp * itemsize
    tb_cap = min(_MAX_BLOCK_ROWS, max(1, _TARGET_BLOCK_BYTES // row_bytes))
    tb_cap = max(sub, (tb_cap // sub) * sub)
    ntiles = max(2, _cdiv(B, tb_cap))                        # >=2 steps -> both v7x TCs
    tb = min(tb_cap, _round_up(_cdiv(B, ntiles), sub))
    grid = (_cdiv(B, tb),)                                   # ragged tail handled by
                                                             # Pallas boundary clipping
                                                             # (rows are independent)

    in_specs = [pl.BlockSpec((tb, FDp), lambda i: (i, 0))]
    if reduce_sum:
        kernel = functools.partial(_fm_reduce_kernel, num_fields=Fp, embed_dim=D)
        out_shape = jax.ShapeDtypeStruct((B, 1), x.dtype)
        out_specs = pl.BlockSpec((tb, 1), lambda i: (i, 0))
        out_bytes = B * 1 * itemsize
    else:
        kernel = functools.partial(_fm_noreduce_kernel, num_fields=Fp, embed_dim=D)
        out_shape = jax.ShapeDtypeStruct((B, D), x.dtype)
        out_specs = pl.BlockSpec((tb, D), lambda i: (i, 0))
        out_bytes = B * D * itemsize

    cost = pl.CostEstimate(
        flops=int(5 * B * FDp),
        transcendentals=0,
        bytes_accessed=int(B * FDp * itemsize + out_bytes),
    )
    compiler_params = pltpu.CompilerParams(
        dimension_semantics=("parallel",),
        vmem_limit_bytes=_VMEM_LIMIT_BYTES,
    )

    return pl.pallas_call(
        kernel,
        out_shape=out_shape,
        grid=grid,
        in_specs=in_specs,
        out_specs=out_specs,
        compiler_params=compiler_params,
        cost_estimate=cost,
    )(xin)


def _reference(x, reduce_sum=True):
    square_of_sum = jnp.sum(x, axis=1) ** 2
    sum_of_square = jnp.sum(x ** 2, axis=1)
    ix = square_of_sum - sum_of_square
    if reduce_sum:
        ix = jnp.sum(ix, axis=1, keepdims=True)
    return 0.5 * ix


if __name__ == "__main__":
    key = jax.random.PRNGKey(0)
    k0, k1 = jax.random.split(key)

    # ---- aligned path: F*D == 128 (no padding, free flatten) ----
    B, F, D = 16, 4, 32
    x = jax.random.normal(k0, (B, F, D), dtype=jnp.float32)

    out = jax.block_until_ready(factorization_machine(x, reduce_sum=True))
    ref = _reference(x, reduce_sum=True)
    assert out.shape == (B, 1)
    assert jnp.allclose(out, ref, atol=1e-4, rtol=1e-4), "mismatch (aligned, reduce)"

    out2 = jax.block_until_ready(factorization_machine(x, reduce_sum=False))
    ref2 = _reference(x, reduce_sum=False)
    assert out2.shape == (B, D)
    assert jnp.allclose(out2, ref2, atol=1e-4, rtol=1e-4), "mismatch (aligned, no-reduce)"

    # ---- odd shape: F*D = 80 -> field axis padded to Fp=8, ragged batch ----
    B2, F2, D2 = 10, 5, 16
    x2 = jax.random.normal(k1, (B2, F2, D2), dtype=jnp.float32)

    out3 = jax.block_until_ready(factorization_machine(x2, reduce_sum=True))
    ref3 = _reference(x2, reduce_sum=True)
    assert out3.shape == (B2, 1)
    assert jnp.allclose(out3, ref3, atol=1e-4, rtol=1e-4), "mismatch (padded, reduce)"

    out4 = jax.block_until_ready(factorization_machine(x2, reduce_sum=False))
    ref4 = _reference(x2, reduce_sum=False)
    assert out4.shape == (B2, D2)
    assert jnp.allclose(out4, ref4, atol=1e-4, rtol=1e-4), "mismatch (padded, no-reduce)"

    print("KERNEL_OK")
</pallas_src>

<mosaic_0001>
module attributes {stable_mosaic.version = 11 : i64} {
  func.func @_fm_reduce_kernel(%arg0: i32, %arg1: memref<8x128xf32, #tpu.memory_space<vmem>>, %arg2: memref<8x1xf32, #tpu.memory_space<vmem>>) attributes {dimension_semantics = [#tpu.dimension_semantics<parallel>], iteration_bounds = array<i64: 2>, scalar_prefetch = 0 : i64, scratch_operands = 0 : i64, tpu.core_type = #tpu.core_type<tc>, window_params = [{transform_indices = @transform_0, window_bounds = array<i64: 8, 128>}, {transform_indices = @transform_1, window_bounds = array<i64: 8, 1>}]} {
    %c0 = arith.constant 0 : index
    %c0_0 = arith.constant 0 : index
    %0 = vector.load %arg1[%c0, %c0_0] : memref<8x128xf32, #tpu.memory_space<vmem>>, vector<8x128xf32>
    %c32_i32 = arith.constant 32 : i32
    %1 = tpu.dynamic_rotate %0 by %c32_i32 dim 1 : vector<8x128xf32>, i32 -> vector<8x128xf32>
    %2 = arith.addf %0, %1 : vector<8x128xf32>
    %c64_i32 = arith.constant 64 : i32
    %3 = tpu.dynamic_rotate %2 by %c64_i32 dim 1 : vector<8x128xf32>, i32 -> vector<8x128xf32>
    %4 = arith.addf %2, %3 : vector<8x128xf32>
    %5 = arith.mulf %4, %4 : vector<8x128xf32>
    %6 = arith.mulf %0, %0 : vector<8x128xf32>
    %cst = arith.constant 4.000000e+00 : f32
    %7 = vector.broadcast %cst : f32 to vector<8x128xf32>
    %8 = arith.mulf %6, %7 : vector<8x128xf32>
    %9 = arith.subf %5, %8 : vector<8x128xf32>
    %cst_1 = arith.constant 1.000000e+00 : f32
    %10 = vector.broadcast %cst_1 : f32 to vector<128x1xf32>
    %cst_2 = arith.constant dense<0.000000e+00> : vector<8x1xf32>
    %11 = tpu.matmul %9, %10, %cst_2 {dimension_numbers = #tpu.dot_dimension_numbers<[1], [0], [0], [1], [0, 0, 1, 1], [], []>} : vector<8x128xf32>, vector<128x1xf32>, vector<8x1xf32> -> vector<8x1xf32>
    %cst_3 = arith.constant 1.250000e-01 : f32
    %12 = vector.broadcast %cst_3 : f32 to vector<8x1xf32>
    %13 = arith.mulf %11, %12 : vector<8x1xf32>
    %c0_4 = arith.constant 0 : index
    %c0_5 = arith.constant 0 : index
    %14 = vector.load %arg2[%c0_4, %c0_5] : memref<8x1xf32, #tpu.memory_space<vmem>>, vector<8x1xf32>
    tpu.vector_store %arg2[%c0_4, %c0_5], %13 {strides = array<i32>} : memref<8x1xf32, #tpu.memory_space<vmem>>, vector<8x1xf32>,
    return
  }
  func.func @transform_0(%arg0: i32) -> (i32, i32) {
    %c0_i32 = arith.constant 0 : i32
    %c0_i32_0 = arith.constant 0 : i32
    return %arg0, %c0_i32 : i32, i32
  }
  func.func @transform_1(%arg0: i32) -> (i32, i32) {
    %c0_i32 = arith.constant 0 : i32
    %c0_i32_0 = arith.constant 0 : i32
    return %arg0, %c0_i32 : i32, i32
  }
}

</mosaic_0001>

<bundles_post_ra>
// kernel: tpu_custom_call.1
= control target key start
LH: loop header
LB: loop body
LE: loop exit
PB: predicated region body
PF: predicated region fallthrough
CT: control target
= control target key end

     0   :  { %6 = vsyncpa [#allocation3], 0  ;;  %s567_s0 = inlined_call_operand.hbm [shape: f32[16,128], index: 0, kind: input, shape index: {}]   ;;  %s568_s1 = inlined_call_operand.vmem [shape: f32[16,1], index: 1, kind: output, shape index: {}]  }
   0x1   :  { %8 = vsyncpa [#allocation3 + $0x1], 0  ;;  %s467_s6 = smov 0   ;;  %s469_s7 = smov 0  }
   0x2   :  { %s471_s8 = smov 0   ;;  %s473_s9 = smov 0  }
   0x3 LB: > { %s486_s10 = sadd.s32 4294967295, %s449_s9   ;;  %s489_s11 = sadd.s32 1, %s449_s9   ;;  %s449_s9 = sphi %s473_s9, %s578_s9   ;;  %s445_s8 = sphi %s471_s8, %s577_s8   ;;  %s441_s7 = sphi %s469_s7, %s576_s7   ;;  %s437_s6 = sphi %s467_s6, %s575_s6  }
   0x4   : > { %s18_s12 = ssub.s32 %s449_s9, %s489_s11  ;;  %s21_s13 = sadd.s32 1, %s445_s8 }
   0x5   : > { %p19_p0 = scmp.eq.s32.totalorder %s18_s12, 0  ;;  %p28_p1 = scmp.ne.s32.totalorder %s445_s8, %s441_s7 }
   0x6   : > { %p29_p2 = scmp.eq.s32.totalorder %s449_s9, 0  ;;  %p34_p3 = scmp.ne.s32.totalorder %s441_s7, %s437_s6 }
   0x7   : > { %s499_s14 = scalar_select %p19_p0, %s445_s8, %s21_s13  }
   0x8   : > { %p30_p4 = por %p29_p2, %p28_p1  ;;  %p35_p5 = scmp.eq.s32.totalorder %s486_s10, 0 }
   0x9   : > { %p349_p6 = scmp.lt.s32.totalorder %s449_s9, 2  ;;  %s84_s16 = sand.u32 1, %s445_s8  }
   0xa   : > { %p503_p7 = por %p35_p5, %p34_p3  ;;  %s284_s17 = sshll.u32 %s84_s16, 3 }
   0xb   : > { %s285_s18 = sshll.u32 %s449_s9, 7  ;;  %s88_s22 = scalar_lea.vmem [#allocation2], %s284_s17 }
   0xc   : > { %s570_s15 = scalar_select %p503_p7, 1, 0 }
   0xd   : > { %s512_s21 = scalar_lea.hbm %s567_s0, %s285_s18  ;;  %s95_s23 = sshll.u32 %s88_s22, 4  ;;  %s514_s23 = int_to_ptr.vmem [resolvable:$true] %s95_s23 }
   0xe   : > { %p516_p8 = pnand %p349_p6, %p30_p4  ;;  %s85_s25 = scalar_lea.sflag [#allocation3], %s84_s16 }
   0xf   : > { %s387_s26 = scalar_lea.hbm %s512_s21, 128  ;;  %s392_s29 = scalar_lea.hbm %s567_s0, 256 }
  0x10   : > { %p388_p11 = scmp.ne.s32.totalorder %s512_s21, %s387_s26  ;;  %p389_p12 = pneg %p516_p8 }
  0x11   : > { %p393_p1 = scmp.lt.s32.totalorder %s512_s21, %s567_s0  ;;  %p394_p2 = scmp.lt.s32.totalorder %s392_s29, %s387_s26 }
  0x12   : > { %p390_p13 = pnand %p389_p12, %p388_p11 }
  0x13   : > { %p395_p3 = por %p394_p2, %p393_p1 }
  0x14   : > { %p391_p0 = pneg %p390_p13 }
  0x16   : > { %p396_p4 = pnand %p395_p3, %p391_p0 }
  0x18   : > { %399 = shalt.err (!%p396_p4)
}
  0x19   : > { %s400_s3 = scalar_lea.vmem %s514_s23, 128  ;;  %s451_s4 = smov [#allocation2]  }
  0x1a   : > { %p401_p5 = scmp.ne.s32.totalorder %s514_s23, %s400_s3  ;;  %s405_s5 = sshll.u32 %s451_s4, 4  ;;  %s406_s5 = int_to_ptr.vmem [resolvable:$false] %s405_s5 }
  0x1b   : > { %s407_s6 = scalar_lea.vmem %s406_s5, 256  ;;  %p408_p13 = scmp.lt.s32.totalorder %s514_s23, %s406_s5 }
  0x1c   : > { %p403_p6 = pnand %p401_p5, %p389_p12  ;;  %p409_p9 = scmp.lt.s32.totalorder %s407_s6, %s400_s3 }
  0x1e   : > { %p404_p11 = pneg %p403_p6  ;;  %p410_p10 = por %p409_p9, %p408_p13 }
  0x20   : > { %p411_p7 = pnand %p410_p10, %p404_p11 }
  0x22   : > { %414 = shalt.err (!%p411_p7)
}
  0x23   : > { %348 = dma.hbm_to_vmem [thread:$0]  (!%p516_p8), %s512_s21, 128, %s514_s23, %s85_s25  }
  0x24   : > { %p572_p0 = scmp.lt.s32.totalorder %s449_s9, 3  ;;  %p573_p1 = scmp.ge.s32.totalorder %s449_s9, 1 }
  0x26   : > { %p101_p12 = pnand %p573_p1, %p572_p0 }
  0x27   : > { %s106_s12 = sand.u32 (!%p101_p12), 1, %s441_s7   ;;  %p574_p9 = scmp.ne.s32.totalorder (!%p101_p12), %s570_s15, 0 }
  0x28   : > { %104 = sbr.rel (%p101_p12) target bundleno = 481 (0x1e1), region = 24  ;;  %s287_s13 = sshll.u32 (!%p101_p12), %s106_s12, 3 }
  0x29   : > { %s107_s16 = scalar_lea.sflag (!%p101_p12), [#allocation3], %s106_s12  ;;  %s110_s17 = scalar_lea.vmem (!%p101_p12), [#allocation2], %s287_s13 }
  0x2d   : > { %432 = dma.done.wait (%p574_p9), %s107_s16, 128  }
  0x2e   : > { %434 = vsyncadd (%p574_p9), %s107_s16, 4294967168  ;;  %v452_v0 = vmov 0.0   ;;  %v453_v1 = vmov 1.0   ;;  %v132_v2 = vld [vmem:[%s110_s17] sm:$0xff]  ;;  %s454_s9 = smov 32   ;;  %vm455_vm0 = vmmov 0  }
  0x2f   : > { %308 = vmatprep.subr.mxu0 %v452_v0  ;;  %133 = vrot.lane.b32.xlu0 %v132_v2, %s454_s9  ;;  %s456_s15 = smov 64   ;;  %v140_v5 = vmul.f32 %v132_v2, %v132_v2  ;;  %p128_p7 = scmp.lt.s32.totalorder %s486_s10, 1  ;;  %vm214_vm1 = vcmask 7168  }
  0x30   : > { %309 = vmatpush3.msra.mxu0 %v453_v1  ;;  %340 = vmatprep.mubr.msk.f32.mxu0 %vm455_vm0, %v452_v0 }
  0x31   : > { %310 = vmatprep.subr.mxu0 %v452_v0  ;;  %v141_v7 = vmul.f32 4.0, %v140_v5  ;;  %s580_s10 = smov (!%p128_p7, %s486_s10), 1 }
  0x32   : > { %311 = vmatpush3.msra.mxu0 %v453_v1  ;;  %s288_s18 = sshll.u32 %s580_s10, 3 }
  0x33   : > { %312 = vmatprep.subr.mxu0 %v452_v0  ;;  %s131_s21 = scalar_lea.vmem %s568_s1, %s288_s18 }
  0x34   : > { %313 = vmatpush3.msra.mxu0 %v453_v1 }
  0x35   : > { %314 = vmatprep.subr.mxu0 %v452_v0 }
  0x36   : > { %315 = vmatpush3.msra.mxu0 %v453_v1 }
  0x37   : > { %316 = vmatprep.subr.mxu0 %v452_v0 }
  0x38   : > { %317 = vmatpush3.msra.mxu0 %v453_v1 }
  0x39   : > { %318 = vmatprep.subr.mxu0 %v452_v0 }
  0x3a   : > { %319 = vmatpush3.msra.mxu0 %v453_v1 }
  0x3b   : > { %320 = vmatprep.subr.mxu0 %v452_v0 }
  0x3c   : > { %321 = vmatpush3.msra.mxu0 %v453_v1 }
  0x3d   : > { %322 = vmatprep.subr.mxu0 %v452_v0 }
  0x3e   : > { %323 = vmatpush3.msra.mxu0 %v453_v1 }
  0x3f   : > { %324 = vmatprep.subr.mxu0 %v452_v0 }
  0x40   : > { %325 = vmatpush3.msra.mxu0 %v453_v1 }
  0x41   : > { %326 = vmatprep.subr.mxu0 %v452_v0 }
  0x42   : > { %327 = vmatpush3.msra.mxu0 %v453_v1 }
  0x43   : > { %328 = vmatprep.subr.mxu0 %v452_v0 }
  0x44   : > { %329 = vmatpush3.msra.mxu0 %v453_v1 }
  0x45   : > { %330 = vmatprep.subr.mxu0 %v452_v0 }
  0x46   : > { %331 = vmatpush3.msra.mxu0 %v453_v1 }
  0x47   : > { %332 = vmatprep.subr.mxu0 %v452_v0 }
  0x48   : > { %333 = vmatpush3.msra.mxu0 %v453_v1 }
  0x49   : > { %334 = vmatprep.subr.mxu0 %v452_v0 }
  0x4a   : > { %335 = vmatpush3.msra.mxu0 %v453_v1 }
  0x4b   : > { %336 = vmatprep.subr.mxu0 %v452_v0 }
  0x4c   : > { %337 = vmatpush3.msra.mxu0 %v453_v1 }
  0x4d   : > { %338 = vmatprep.subr.mxu0 %v452_v0 }
  0x4e   : > { %339 = vmatpush3.msra.mxu0 %v453_v1 }
  0xa1   : > { %v134_v3 = vpop.permute.xlu0 %133 }
  0xa2   : > { %v135_v4 = vadd.f32 %v134_v3, %v132_v2 }
  0xa4   : > { %136 = vrot.lane.b32.xlu0 %v135_v4, %s456_s15 }
 0x116   : > { %v137_v6 = vpop.permute.xlu0 %136 }
 0x117   : > { %v138_v8 = vadd.f32 %v137_v6, %v135_v4 }
 0x119   : > { %v139_v9 = vmul.f32 %v138_v8, %v138_v8 }
 0x11b   : > { %v142_v10 = vsub.f32 %v139_v9, %v141_v7 }
 0x11d   : > { %341 = vmatmul.mubr.f32.vlgmr.msra.gmra.mxu0 %v142_v10 }
 0x1dd   : > { %v209_v11 = vpop.f32.mrf.mxu0 }
 0x1de   : > { %v213_v12 = vmul.f32 0.125, %v209_v11 }
 0x1df   : > { %v342_v13 = vpop.f32.mrf.mxu0 }
 0x1e0   : > { %215 = vst.msk [vmem:[%s131_s21] sm:$0xff] %vm214_vm1, %v213_v12 }
 0x1e1 PF: > { %p11_p8 = scmp.ge.s32.totalorder %s489_s11, 4   ;;  %s575_s6 = smov %s441_s7 }
 0x1e2   : > { %s576_s7 = smov %s445_s8  ;;  %s577_s8 = smov %s499_s14 }
 0x1e3   : > { %s578_s9 = smov %s489_s11  ;;  %13 = sbr.rel (!%p11_p8) target bundleno = 3 (0x3), region = 64 }
 0x1e8   :  { %235 = vsyncpa [#allocation3], 1 }
 0x1e9   :  { %237 = vsyncpa [#allocation3 + $0x1], 1 }

</bundles_post_ra>
